<compile_context>
chip_gen: v7x
topology: tpu7x:2x2x1
jax: 0.10.0
libtpu: 0.0.40
codegen_flags: <defaults>
</compile_context>

<pallas_src>
import math

import jax
import jax.numpy as jnp
from jax.experimental import pallas as pl
from jax.experimental.pallas import tpu as pltpu


# ----------------------------------------------------------------------------
# Buffers / parameters (mirror the PyTorch module's __init__)
# ----------------------------------------------------------------------------

def make_rope_buffers(theta: float, d_k: int, max_seq_len: int):
    """sin/cos tables exactly as the PyTorch module's __init__ builds them."""
    assert d_k % 2 == 0, "d_k must be divisible by 2"
    positions = jnp.arange(max_seq_len, dtype=jnp.float32)[:, None]      # (L, 1)
    freqs = jnp.arange(0, d_k // 2, dtype=jnp.float32)                   # (d_k/2,)
    theta_vals = positions / (theta ** (2.0 * freqs / d_k))              # (L, d_k/2)
    return jnp.sin(theta_vals), jnp.cos(theta_vals)


def make_rope_denominators(theta: float, d_k: int):
    """Signed, interleaved denominators used by the kernel.

    denom_signed[2i]   = -theta**(2i/d_k)
    denom_signed[2i+1] = +theta**(2i/d_k)

    ang = pos / denom_signed then gives cos(ang) = cos(theta_i*pos) on both lanes
    of a pair (cos is even) and sin(ang) = -/+ sin(theta_i*pos) on even/odd lanes,
    i.e. the rotation sign is baked in.  Same f32 power/division as the PyTorch
    table construction, so angles are bit-identical to the reference tables.
    """
    assert d_k % 2 == 0, "d_k must be divisible by 2"
    freqs = jnp.arange(0, d_k // 2, dtype=jnp.float32)
    denom = jnp.asarray(theta, jnp.float32) ** (2.0 * freqs / d_k)       # (d_k/2,)
    return jnp.stack([-denom, denom], axis=-1).reshape(d_k)              # (d_k,)


# ----------------------------------------------------------------------------
# Kernels
# ----------------------------------------------------------------------------

def _pair_swap(x):
    """partner[..., 2i] = x[..., 2i+1]; partner[..., 2i+1] = x[..., 2i].

    Two XLU lane rotates + one select.  Pairs never straddle the row because the
    lane width is even, so the wrap-around lanes are never selected.
    """
    n_lanes = x.shape[-1]
    lane = jax.lax.broadcasted_iota(jnp.int32, (1, n_lanes), 1)   # tiny (1, L) iota
    is_even = (lane & 1) == 0
    x_next = pltpu.roll(x, shift=n_lanes - 1, axis=1)             # x[(j+1) % L]
    x_prev = pltpu.roll(x, shift=1, axis=1)                       # x[(j-1) % L]
    return jnp.where(is_even, x_next, x_prev)


def _make_rope_trig_kernel(k: int):
    """Primary kernel: coefficients recomputed in-kernel (no HBM coefficients).

    Row layout packs k original (token, head) rows per kernel row (width L=k*d_k).
    pos_ref: (tile_r, k) f32, seg_ref: (k, L) one-hot segment masks (k>1 only),
    denom_ref: (1, L) signed denominators.
    """
    def _body(pos_ref, x_ref, seg_ref, denom_ref, o_ref):
        x = x_ref[...].astype(jnp.float32)                  # (tile_r, L)
        pos = pos_ref[...]                                  # (tile_r, k) f32
        if k == 1:
            pos_lane = pos                                  # (tile_r, 1) -> lane bcast
        else:
            # pos_lane[r, m] = pos[r, m // d_k]; exact (0/1 masks), pure VPU.
            seg = seg_ref[...]                              # (k, L)
            pos_lane = pos[:, 0:1] * seg[0:1, :]
            for j in range(1, k):
                pos_lane = pos_lane + pos[:, j:j + 1] * seg[j:j + 1, :]
        ang = pos_lane / denom_ref[...]                     # (tile_r, L) signed angles
        c = jnp.cos(ang)
        s = jnp.sin(ang)                                    # sign baked via denom
        partner = _pair_swap(x)
        o_ref[...] = (x * c + partner * s).astype(o_ref.dtype)

    if k == 1:
        def kernel(pos_ref, x_ref, denom_ref, o_ref):
            _body(pos_ref, x_ref, None, denom_ref, o_ref)
    else:
        def kernel(pos_ref, x_ref, seg_ref, denom_ref, o_ref):
            _body(pos_ref, x_ref, seg_ref, denom_ref, o_ref)
    return kernel


def _rope_coef_kernel(x_ref, cos_ref, sin_ref, o_ref):
    """Fallback kernel: streamed precomputed f32 coefficients (previous design)."""
    x = x_ref[...].astype(jnp.float32)
    partner = _pair_swap(x)
    o_ref[...] = (x * cos_ref[...] + partner * sin_ref[...]).astype(o_ref.dtype)


# ----------------------------------------------------------------------------
# Capability probe: in-kernel sin/cos support in the Mosaic lowering.
# ----------------------------------------------------------------------------

_TRIG_IN_KERNEL = None


def _disable_trig_in_kernel():
    global _TRIG_IN_KERNEL
    _TRIG_IN_KERNEL = False


def _trig_in_kernel_supported() -> bool:
    global _TRIG_IN_KERNEL
    if _TRIG_IN_KERNEL is None:
        def probe(x_ref, o_ref):
            o_ref[...] = jnp.sin(x_ref[...]) + jnp.cos(x_ref[...])
        try:
            r = pl.pallas_call(
                probe, out_shape=jax.ShapeDtypeStruct((8, 128), jnp.float32)
            )(jnp.zeros((8, 128), jnp.float32))
            jax.block_until_ready(r)
            _TRIG_IN_KERNEL = True
        except Exception:
            _TRIG_IN_KERNEL = False
    return _TRIG_IN_KERNEL


# ----------------------------------------------------------------------------
# Tiling helpers
# ----------------------------------------------------------------------------

def _pick_row_tile(n_rows: int, lane_width: int, itemsize: int,
                   target_bytes: int = 2 * 1024 * 1024) -> int:
    """Row block: multiple of 8, one x tile ~target_bytes, and >=2 grid steps
    whenever possible (v7x megacore).  ~2 MiB keeps per-step live VMEM
    (double-buffered I/O + ~5-6 f32 block temporaries) well under v7x's 64 MiB."""
    if n_rows <= 8:
        return n_rows
    cap = max(8, (target_bytes // (lane_width * itemsize)) // 8 * 8)
    half = (((n_rows + 1) // 2) + 7) // 8 * 8        # split into >=2 blocks
    max_tile = (n_rows // 8) * 8
    return max(8, min(cap, half, max_tile))


def _pick_packing(d_k: int, n_rows: int) -> int:
    """Pack k consecutive rows per kernel row so k*d_k is a multiple of 128
    (unmasked vst); k==1 falls back to a (rows, d_k) layout whose block last
    dim equals the full array dim (legal, possibly masked)."""
    k = 128 // math.gcd(d_k, 128)
    if k == 1 or k > 8 or n_rows % k != 0:
        return 1
    return k


# ----------------------------------------------------------------------------
# Forward
# ----------------------------------------------------------------------------

def rope_forward(x, token_positions, denom_signed):
    """x: (..., S, d_k); token_positions: (..., S), right-aligned-broadcastable to
    x.shape[:-1] (same broadcasting rule as the PyTorch module, e.g. pass (B,1,S)
    if x is (B,H,S,d_k)).  denom_signed: (d_k,) from make_rope_denominators."""
    orig_shape = x.shape
    D = orig_shape[-1]
    assert D % 2 == 0, "d_k must be divisible by 2"
    assert denom_signed.shape == (D,)

    pos = jnp.broadcast_to(token_positions, orig_shape[:-1]).reshape(-1)  # (rows,)
    pos_f = pos.astype(jnp.float32)
    rows = pos_f.shape[0]

    k = _pick_packing(D, rows)
    L = k * D
    Rp = rows // k

    x2d = x.reshape(Rp, L)                         # lane-dense flat view (free reshape)
    tile_r = _pick_row_tile(Rp, L, max(jnp.dtype(x.dtype).itemsize, 4))
    grid = (pl.cdiv(Rp, tile_r),)
    xo_spec = pl.BlockSpec((tile_r, L), lambda i: (i, 0))
    cparams = pltpu.CompilerParams(
        dimension_semantics=("parallel",),
        vmem_limit_bytes=48 * 1024 * 1024,
    )

    if _trig_in_kernel_supported():
        # Primary path: no HBM coefficient arrays at all.  Positions stream as a
        # tiny (Rp, k) f32 column (k/L of x's bytes); the (1, L) signed
        # denominators and the (k, L) segment masks stay resident in VMEM.
        # TODO(synk): for contiguous prefill positions the position column could
        # move to SMEM via PrefetchScalarGridSpec(num_scalar_prefetch=1).
        pos_pk = pos_f.reshape(Rp, k)
        denom_row = jnp.tile(denom_signed.astype(jnp.float32), (k,)).reshape(1, L)
        ins = [pos_pk, x2d]
        specs = [pl.BlockSpec((tile_r, k), lambda i: (i, 0)), xo_spec]
        if k > 1:
            seg = jnp.repeat(jnp.eye(k, dtype=jnp.float32), D, axis=1)   # (k, L)
            ins.append(seg)
            specs.append(pl.BlockSpec((k, L), lambda i: (0, 0)))
        ins.append(denom_row)
        specs.append(pl.BlockSpec((1, L), lambda i: (0, 0)))
        try:
            out2d = pl.pallas_call(
                _make_rope_trig_kernel(k),
                out_shape=jax.ShapeDtypeStruct((Rp, L), x.dtype),
                grid_spec=pltpu.PrefetchScalarGridSpec(
                    num_scalar_prefetch=0,
                    grid=grid,
                    in_specs=specs,
                    out_specs=xo_spec,
                ),
                compiler_params=cparams,
                input_output_aliases={1: 0},        # RoPE applied in place on x
            )(*ins)
            return out2d.reshape(orig_shape)
        except Exception:
            _disable_trig_in_kernel()               # fall through to coefficient path

    # Fallback path (only if in-kernel trig is unavailable): build f32
    # coefficients with XLA and stream them (previous, known-good design).
    ang = pos_f[:, None] / denom_signed[None, :].astype(jnp.float32)      # (rows, D)
    cos2d = jnp.cos(ang).reshape(Rp, L)
    sin2d = jnp.sin(ang).reshape(Rp, L)
    out2d = pl.pallas_call(
        _rope_coef_kernel,
        out_shape=jax.ShapeDtypeStruct((Rp, L), x.dtype),
        grid_spec=pltpu.PrefetchScalarGridSpec(
            num_scalar_prefetch=0,
            grid=grid,
            in_specs=[xo_spec, xo_spec, xo_spec],
            out_specs=xo_spec,
        ),
        compiler_params=cparams,
        input_output_aliases={0: 0},
    )(x2d, cos2d, sin2d)
    return out2d.reshape(orig_shape)


class RotaryPositionalEmbedding:
    """Thin functional mirror of the PyTorch module."""

    def __init__(self, theta: float, d_k: int, max_seq_len: int):
        self.theta, self.d_k, self.max_seq_len = theta, d_k, max_seq_len
        self.denom_signed = make_rope_denominators(theta, d_k)
        self.sin_vals, self.cos_vals = make_rope_buffers(theta, d_k, max_seq_len)

    def __call__(self, x, token_positions):
        return rope_forward(x, token_positions, self.denom_signed)


# ----------------------------------------------------------------------------
# Pure-JAX reference (reproduces the PyTorch forward exactly)
# ----------------------------------------------------------------------------

def _rope_reference(x, token_positions, sin_vals, cos_vals):
    sin = sin_vals[token_positions]
    cos = cos_vals[token_positions]
    x1 = x[..., 0::2]
    x2 = x[..., 1::2]
    out = jnp.zeros_like(x)
    out = out.at[..., 0::2].set((x1 * cos - x2 * sin).astype(x.dtype))
    out = out.at[..., 1::2].set((x1 * sin + x2 * cos).astype(x.dtype))
    return out


if __name__ == "__main__":
    theta = 10000.0
    d_k = 32
    max_seq_len = 64
    batch = 2
    seq = 8

    rope = RotaryPositionalEmbedding(theta, d_k, max_seq_len)

    key = jax.random.PRNGKey(0)
    kx, kp = jax.random.split(key)
    x = jax.random.normal(kx, (batch, seq, d_k), dtype=jnp.float32)
    token_positions = jax.random.randint(
        kp, (batch, seq), minval=0, maxval=max_seq_len, dtype=jnp.int32
    )

    # Reference computed first (table-based, bit-faithful to the PyTorch module).
    ref = _rope_reference(x, token_positions, rope.sin_vals, rope.cos_vals)

    out = rope.__call__(x, token_positions)
    out = jax.block_until_ready(out)

    assert out.shape == x.shape and out.dtype == x.dtype
    # Angles are bit-identical to the table construction; the only divergence on
    # the in-kernel-trig path is the sin/cos implementation delta (~1e-6).
    assert jnp.allclose(out, ref, atol=5e-5, rtol=5e-5), \
        float(jnp.max(jnp.abs(out - ref)))

    print("KERNEL_OK")
</pallas_src>

<mosaic_0001>
module attributes {stable_mosaic.version = 11 : i64} {
  func.func @probe(%arg0: memref<8x128xf32, #tpu.memory_space<vmem>>, %arg1: memref<8x128xf32, #tpu.memory_space<vmem>>) attributes {dimension_semantics = [], scalar_prefetch = 0 : i64, scratch_operands = 0 : i64, tpu.core_type = #tpu.core_type<tc>} {
    %c0 = arith.constant 0 : index
    %c0_0 = arith.constant 0 : index
    %0 = vector.load %arg0[%c0, %c0_0] : memref<8x128xf32, #tpu.memory_space<vmem>>, vector<8x128xf32>
    %1 = math.sin %0 : vector<8x128xf32>
    %c0_1 = arith.constant 0 : index
    %c0_2 = arith.constant 0 : index
    %2 = vector.load %arg0[%c0_1, %c0_2] : memref<8x128xf32, #tpu.memory_space<vmem>>, vector<8x128xf32>
    %3 = math.cos %2 : vector<8x128xf32>
    %4 = arith.addf %1, %3 : vector<8x128xf32>
    %c0_3 = arith.constant 0 : index
    %c0_4 = arith.constant 0 : index
    %5 = vector.load %arg1[%c0_3, %c0_4] : memref<8x128xf32, #tpu.memory_space<vmem>>, vector<8x128xf32>
    tpu.vector_store %arg1[%c0_3, %c0_4], %4 {strides = array<i32>} : memref<8x128xf32, #tpu.memory_space<vmem>>, vector<8x128xf32>,
    return
  }
}

module attributes {stable_mosaic.version = 11 : i64} {
  func.func @_rope_coef_kernel(%arg0: i32, %arg1: memref<4x128xf32, #tpu.memory_space<vmem>>, %arg2: memref<4x128xf32, #tpu.memory_space<vmem>>, %arg3: memref<4x128xf32, #tpu.memory_space<vmem>>, %arg4: memref<4x128xf32, #tpu.memory_space<vmem>>) attributes {dimension_semantics = [#tpu.dimension_semantics<parallel>], iteration_bounds = array<i64: 1>, scalar_prefetch = 0 : i64, scratch_operands = 0 : i64, tpu.core_type = #tpu.core_type<tc>, window_params = [{transform_indices = @transform_0, window_bounds = array<i64: 4, 128>}, {transform_indices = @transform_1, window_bounds = array<i64: 4, 128>}, {transform_indices = @transform_2, window_bounds = array<i64: 4, 128>}, {transform_indices = @transform_3, window_bounds = array<i64: 4, 128>}]} {
    %c0 = arith.constant 0 : index
    %c0_0 = arith.constant 0 : index
    %0 = vector.load %arg1[%c0, %c0_0] : memref<4x128xf32, #tpu.memory_space<vmem>>, vector<4x128xf32>
    %1 = tpu.iota {dimensions = array<i32: 1>} : vector<1x128xi32>
    %c1_i32 = arith.constant 1 : i32
    %2 = vector.broadcast %c1_i32 : i32 to vector<1x128xi32>
    %3 = arith.andi %1, %2 : vector<1x128xi32>
    %c0_i32 = arith.constant 0 : i32
    %4 = vector.broadcast %c0_i32 : i32 to vector<1x128xi32>
    %5 = arith.cmpi eq, %3, %4 : vector<1x128xi32>
    %c127_i32 = arith.constant 127 : i32
    %6 = tpu.dynamic_rotate %0 by %c127_i32 dim 1 : vector<4x128xf32>, i32 -> vector<4x128xf32>
    %c1_i32_1 = arith.constant 1 : i32
    %7 = tpu.dynamic_rotate %0 by %c1_i32_1 dim 1 : vector<4x128xf32>, i32 -> vector<4x128xf32>
    %8 = vector.shape_cast %5 : vector<1x128xi1> to vector<1x128xi1>
    %9 = vector.broadcast %8 : vector<1x128xi1> to vector<4x128xi1>
    %10 = arith.select %9, %6, %7 : vector<4x128xi1>, vector<4x128xf32>
    %c0_2 = arith.constant 0 : index
    %c0_3 = arith.constant 0 : index
    %11 = vector.load %arg2[%c0_2, %c0_3] : memref<4x128xf32, #tpu.memory_space<vmem>>, vector<4x128xf32>
    %12 = arith.mulf %0, %11 : vector<4x128xf32>
    %c0_4 = arith.constant 0 : index
    %c0_5 = arith.constant 0 : index
    %13 = vector.load %arg3[%c0_4, %c0_5] : memref<4x128xf32, #tpu.memory_space<vmem>>, vector<4x128xf32>
    %14 = arith.mulf %10, %13 : vector<4x128xf32>
    %15 = arith.addf %12, %14 : vector<4x128xf32>
    %c0_6 = arith.constant 0 : index
    %c0_7 = arith.constant 0 : index
    %16 = vector.load %arg4[%c0_6, %c0_7] : memref<4x128xf32, #tpu.memory_space<vmem>>, vector<4x128xf32>
    tpu.vector_store %arg4[%c0_6, %c0_7], %15 {strides = array<i32>} : memref<4x128xf32, #tpu.memory_space<vmem>>, vector<4x128xf32>,
    return
  }
  func.func @transform_0(%arg0: i32) -> (i32, i32) {
    %c0_i32 = arith.constant 0 : i32
    %c0_i32_0 = arith.constant 0 : i32
    return %arg0, %c0_i32 : i32, i32
  }
  func.func @transform_1(%arg0: i32) -> (i32, i32) {
    %c0_i32 = arith.constant 0 : i32
    %c0_i32_0 = arith.constant 0 : i32
    return %arg0, %c0_i32 : i32, i32
  }
  func.func @transform_2(%arg0: i32) -> (i32, i32) {
    %c0_i32 = arith.constant 0 : i32
    %c0_i32_0 = arith.constant 0 : i32
    return %arg0, %c0_i32 : i32, i32
  }
  func.func @transform_3(%arg0: i32) -> (i32, i32) {
    %c0_i32 = arith.constant 0 : i32
    %c0_i32_0 = arith.constant 0 : i32
    return %arg0, %c0_i32 : i32, i32
  }
}

</mosaic_0001>

<bundles_post_ra>
// kernel: tpu_custom_call.1
= control target key start
LH: loop header
LB: loop body
LE: loop exit
PB: predicated region body
PF: predicated region fallthrough
CT: control target
= control target key end

     0   :  { %6 = vsyncpa [#allocation3], 0  ;;  %s381_s0 = inlined_call_operand.hbm [shape: f32[8,128], index: 0, kind: input, shape index: {}]   ;;  %s382_s1 = inlined_call_operand.hbm [shape: f32[8,128], index: 1, kind: output, shape index: {}]  }
   0x1   :  { %7 = vsyncpa [#allocation4], 0  ;;  %s318_s6 = smov [#allocation2]   ;;  %s270_s10 = scalar_lea.hbm %s381_s0, 128 }
   0x2   :  { %s14_s7 = sshll.u32 %s318_s6, 4  ;;  %p271_p0 = scmp.ne.s32.totalorder %s381_s0, %s270_s10  ;;  %s15_s7 = int_to_ptr.vmem [resolvable:$true] %s14_s7 }
   0x3   :  { %p274_p1 = scmp.lt.u32.totalorder %s270_s10, %s381_s0 }
   0x5   :  { %p276_p2 = pnand %p274_p1, %p271_p0 }
   0x7   :  { %279 = shalt.err (!%p276_p2)
}
   0x8   :  { %s280_s15 = scalar_lea.vmem %s15_s7, 128  ;;  %p285_p4 = scmp.lt.s32.totalorder %s15_s7, %s15_s7 }
   0x9   :  { %p281_p3 = scmp.ne.s32.totalorder %s15_s7, %s280_s15  ;;  %p286_p5 = scmp.lt.s32.totalorder %s280_s15, %s280_s15 }
   0xb   :  { %p287_p6 = por %p286_p5, %p285_p4 }
   0xd   :  { %p288_p7 = pnand %p287_p6, %p281_p3 }
   0xf   :  { %291 = shalt.err (!%p288_p7)
}
  0x10   :  { %17 = dma.hbm_to_vmem [thread:$0]  %s381_s0, 128, %s15_s7, [#allocation3]  }
  0x11   :  { %314 = dma.done.wait [#allocation3], 128  }
  0x12   :  { %315 = vsyncadd [#allocation3], 4294967168  ;;  %v348_v0 = vld [vmem:[#allocation2] sm:$0xff]  ;;  %v319_v12 = vmov 683565275   ;;  %s325_s0 = smov [#allocation5]  }
  0x13   :  { %v25_v1 = vand.u32 2139095040, %v348_v0  ;;  %v22_v3 = vand.u32 2147483647, %v348_v0  ;;  %v320_v14 = vmov 2475754826   ;;  %vm24_vm7 = vcmp.lt.s32.totalorder %v348_v0, 0 }
  0x14   :  { %v321_v16 = vmov 2131351028   ;;  %v322_v18 = vmov 2102212464   ;;  %v323_v20 = vmov 920167782   ;;  %vm114_vm15 = vweird.f32 %v348_v0 }
  0x15   :  { %v26_v2 = vshrl.u32 %v25_v1, 23  ;;  %v29_v6 = vand.u32 8388607, %v22_v3  ;;  %v324_v27 = vmov 1326507024   ;;  %s237_s18 = sshll.u32 %s325_s0, 4  ;;  %s238_s18 = int_to_ptr.vmem [resolvable:$true] %s237_s18 }
  0x16   :  { %vm23_vm8 = vcmp.le.f32.partialorder %v22_v3, 0.7853982  ;;  %s292_s19 = scalar_lea.vmem %s238_s18, 128  ;;  %p297_p9 = scmp.lt.s32.totalorder %s238_s18, %s238_s18 }
  0x17   :  { %v246_v4 = vadd.s32 4294967169, %v26_v2  ;;  %v30_v9 = vor.u32 8388608, %v29_v6  ;;  %p293_p8 = scmp.ne.s32.totalorder %s238_s18, %s292_s19  ;;  %p298_p10 = scmp.lt.s32.totalorder %s292_s19, %s292_s19 }
  0x19   :  { %v32_v5 = vadd.s32 1, %v246_v4  ;;  %v70_v29 = vshll.u32 %v30_v9, 8  ;;  %p299_p11 = por %p298_p10, %p297_p9 }
  0x1b   :  { %vm33_vm0 = vcmp.gt.s32.totalorder %v32_v5, 0  ;;  %p300_p12 = pnand %p299_p11, %p293_p8 }
  0x1c   :  { %v34_v7 = vsel %vm33_vm0, %v32_v5, 0 }
  0x1d   :  { %v36_v8 = vand.u32 31, %v34_v7  ;;  %v35_v10 = vshrl.u32 %v34_v7, 5 }
  0x1f   :  { %v37_v11 = vsub.s32 32, %v36_v8  ;;  %v39_v13 = vshll.u32 %v319_v12, %v36_v8  ;;  %v42_v15 = vshll.u32 %v320_v14, %v36_v8  ;;  %v45_v17 = vshll.u32 %v321_v16, %v36_v8 }
  0x20   :  { %v48_v19 = vshll.u32 %v322_v18, %v36_v8  ;;  %v51_v21 = vshll.u32 %v323_v20, %v36_v8  ;;  %vm54_vm1 = vcmp.lt.s32.totalorder %v35_v10, 1  ;;  %vm57_vm2 = vcmp.lt.s32.totalorder %v35_v10, 4 }
  0x21   :  { %v38_v22 = vshrl.u32 %v319_v12, %v37_v11  ;;  %v40_v23 = vshrl.u32 %v320_v14, %v37_v11  ;;  %v43_v24 = vshrl.u32 %v321_v16, %v37_v11  ;;  %v46_v25 = vshrl.u32 %v322_v18, %v37_v11 }
  0x22   :  { %v49_v26 = vshrl.u32 %v323_v20, %v37_v11  ;;  %v52_v28 = vshrl.u32 %v324_v27, %v37_v11  ;;  %vm55_vm3 = vcmp.lt.s32.totalorder %v35_v10, 2  ;;  %vm56_vm4 = vcmp.lt.s32.totalorder %v35_v10, 3 }
  0x23   :  { %v41_v30 = vor.u32 %v40_v23, %v39_v13  ;;  %v44_v31 = vor.u32 %v43_v24, %v42_v15  ;;  %v47_v32 = vor.u32 %v46_v25, %v45_v17 }
  0x24   :  { %v50_v33 = vor.u32 %v49_v26, %v48_v19  ;;  %v53_v34 = vor.u32 %v52_v28, %v51_v21 }
  0x25   :  { %v58_v35 = vsel %vm54_vm1, %v38_v22, %v41_v30  ;;  %v59_v36 = vsel %vm57_vm2, %v47_v32, 2102212464  ;;  %v62_v37 = vsel %vm54_vm1, %v41_v30, %v44_v31  ;;  %v66_v38 = vsel %vm54_vm1, %v44_v31, %v47_v32 }
  0x26   :  { %v60_v39 = vsel %vm56_vm4, %v44_v31, %v59_v36  ;;  %v63_v40 = vsel %vm57_vm2, %v50_v33, 920167782  ;;  %v67_v41 = vsel %vm57_vm2, %v53_v34, 1326507024 }
  0x27   :  { %v64_v42 = vsel %vm56_vm4, %v47_v32, %v63_v40  ;;  %v68_v43 = vsel %vm56_vm4, %v50_v33, %v67_v41  ;;  %v61_v44 = vsel %vm55_vm3, %v58_v35, %v60_v39 }
  0x28   :  { %v65_v45 = vsel %vm55_vm3, %v62_v37, %v64_v42  ;;  %v69_v46 = vsel %vm55_vm3, %v66_v38, %v68_v43  ;;  %v77_v51 = vmul.u32 %v70_v29, %v61_v44 }
  0x29   :  { %v354_v47 = vmul.u32.u64.low %v70_v29, %v69_v46  ;;  %v355_v48 = vmul.u32.u64.high %v70_v29, %v69_v46, %v354_v47  ;;  %v357_v49 = vmul.u32.u64.low %v70_v29, %v65_v45  ;;  %v358_v50 = vmul.u32.u64.high %v70_v29, %v65_v45, %v357_v49 }
  0x2b   :  { %vm79_vm5 = vc.u32 %v355_v48, %v357_v49  ;;  %v80_v52 = vadd.s32 1, %v358_v50  ;;  %v78_v63 = vadd.s32 %v357_v49, %v355_v48 }
  0x2d   :  { %v81_v53 = vsel %vm79_vm5, %v80_v52, %v358_v50 }
  0x2e   :  { %v82_v54 = vadd.s32 %v81_v53, %v77_v51 }
  0x30   :  { %v83_v55 = vadd.s32 536870912, %v82_v54 }
  0x32   :  { %v84_v56 = vshrl.u32 %v83_v55, 30 }
  0x34   :  { %v85_v57 = vshll.u32 %v84_v56, 30  ;;  %v108_v13 = vsub.s32 4, %v84_v56 }
  0x36   :  { %v86_v58 = vsub.s32 %v82_v54, %v85_v57  ;;  %v109_v16 = vsel %vm24_vm7, %v108_v13, %v84_v56 }
  0x37   :  { %v111_v19 = vsel %vm23_vm8, 0, %v109_v16 }
  0x38   :  { %v88_v59 = vsub.s32 0, %v86_v58  ;;  %v115_v20 = vadd.s32 3, %v111_v19  ;;  %v219_v22 = vand.u32 3, %v111_v19 }
  0x3a   :  { %v247_v60 = vmin.u32 %v88_v59, %v86_v58  ;;  %v116_v21 = vand.u32 3, %v115_v20  ;;  %vm224_vm10 = vcmp.eq.s32.totalorder %v219_v22, 2  ;;  %vm221_vm12 = vcmp.eq.s32.totalorder %v219_v22, 0 }
  0x3b   :  { %vm220_vm14 = vcmp.lt.s32.totalorder %v219_v22, 2 }
  0x3c   :  { %v90_v61 = vclz %v247_v60  ;;  %vm121_vm9 = vcmp.eq.s32.totalorder %v116_v21, 2  ;;  %vm118_vm11 = vcmp.eq.s32.totalorder %v116_v21, 0  ;;  %vm117_vm13 = vcmp.lt.s32.totalorder %v116_v21, 2 }
  0x3e   :  { %v248_v62 = vadd.s32 4294967294, %v90_v61 }
  0x40   :  { %vm249_vm6 = vcmp.lt.s32.totalorder %v248_v62, 0 }
  0x41   :  { %v93_v1 = vsel %vm249_vm6, 0, %v248_v62 }
  0x42   :  { %v94_v2 = vsub.s32 32, %v93_v1  ;;  %v95_v4 = vshll.u32 %v86_v58, %v93_v1  ;;  %v98_v5 = vsub.s32 4294967266, %v93_v1 }
  0x44   :  { %v96_v6 = vshrl.u32 %v78_v63, %v94_v2  ;;  %v99_v7 = vadd.s32 127, %v98_v5 }
  0x46   :  { %v97_v8 = vor.u32 %v96_v6, %v95_v4  ;;  %v100_v9 = vshll.u32 %v99_v7, 23 }
  0x48   :  { %v101_v10 = vor.u32 4788187, %v100_v9  ;;  %v104_v11 = vcvt.s32.f32 %v97_v8 }
  0x4a   :  { %v102_v12 = vand.u32 2147483647, %v101_v10 }
  0x4c   :  { %v105_v14 = vmul.f32 %v104_v11, %v102_v12 }
  0x4e   :  { %v106_v15 = vxor.u32 2147483648, %v105_v14 }
  0x50   :  { %v107_v17 = vsel %vm24_vm7, %v106_v15, %v105_v14 }
  0x51   :  { %v110_v18 = vsel %vm23_vm8, %v348_v0, %v107_v17 }
  0x52   :  { %266 = vcosq.f32 %v110_v18 }
  0x53   :  { %268 = vsinq.f32 %v110_v18 }
  0x5c   :  { %v267_v23 = vpop.eup %266 }
  0x5d   :  { %v269_v24 = vpop.eup %268  ;;  %v122_v25 = vxor.u32 2147483648, %v267_v23 }
  0x5e   :  { %v119_v3 = vxor.u32 2147483648, %v269_v24 }
  0x5f   :  { %v123_v26 = vsel %vm121_vm9, %v122_v25, %v269_v24  ;;  %v226_v27 = vsel %vm224_vm10, %v122_v25, %v269_v24 }
  0x60   :  { %v120_v28 = vsel %vm118_vm11, %v267_v23, %v119_v3  ;;  %v223_v29 = vsel %vm221_vm12, %v267_v23, %v119_v3 }
  0x61   :  { %v124_v30 = vsel %vm117_vm13, %v120_v28, %v123_v26  ;;  %v227_v31 = vsel %vm220_vm14, %v223_v29, %v226_v27 }
  0x62   :  { %v125_v32 = vsel %vm114_vm15, nan, %v124_v30  ;;  %v228_v33 = vsel %vm114_vm15, nan, %v227_v31 }
  0x63   :  { %v229_v34 = vadd.f32 %v228_v33, %v125_v32 }
  0x65   :  { %230 = vst [vmem:[#allocation5] sm:$0xff] %v229_v34 }
  0x66   :  { %303 = shalt.err (!%p300_p12)
}
  0x67   :  { %s304_s22 = scalar_lea.hbm %s382_s1, 128 }
  0x68   :  { %p305_p13 = scmp.ne.s32.totalorder %s382_s1, %s304_s22  ;;  %p308_p0 = scmp.lt.u32.totalorder %s304_s22, %s382_s1 }
  0x6a   :  { %p310_p1 = pnand %p308_p0, %p305_p13 }
  0x6c   :  { %313 = shalt.err (!%p310_p1)
}
  0x6d   :  { %240 = dma.vmem_to_hbm [thread:$0]  %s238_s18, 128, %s382_s1, [#allocation4]  }
  0x6e   :  { %316 = dma.done.wait [#allocation4], 128  }
  0x6f   :  { %317 = vsyncadd [#allocation4], 4294967168 }
  0x70   :  { %244 = vsyncpa [#allocation3], 1 }
  0x71   :  { %245 = vsyncpa [#allocation4], 1 }

// kernel: tpu_custom_call.1
= control target key start
LH: loop header
LB: loop body
LE: loop exit
PB: predicated region body
PF: predicated region fallthrough
CT: control target
= control target key end

     0   :  { %8 = vsyncpa [#allocation3], 0  ;;  %s166_s0 = inlined_call_operand.hbm [shape: f32[4,128], index: 0, kind: input, shape index: {}, may-alias: {0,3}]   ;;  %s167_s1 = inlined_call_operand.vmem [shape: f32[4,128], index: 1, kind: input, shape index: {}]   ;;  %s168_s2 = inlined_call_operand.vmem [shape: f32[4,128], index: 2, kind: input, shape index: {}]   ;;  %s169_s3 = inlined_call_operand.hbm [shape: f32[4,128], index: 3, kind: output, shape index: {}, may-alias: {0,3}]  }
   0x1   :  { %9 = vsyncpa [#allocation4], 0  ;;  %s112_s12 = smov [#allocation2]   ;;  %s64_s16 = scalar_lea.hbm %s166_s0, 64 }
   0x2   :  { %s16_s13 = sshll.u32 %s112_s12, 4  ;;  %p65_p0 = scmp.ne.s32.totalorder %s166_s0, %s64_s16  ;;  %s17_s13 = int_to_ptr.vmem [resolvable:$true] %s16_s13 }
   0x3   :  { %p68_p1 = scmp.lt.u32.totalorder %s64_s16, %s166_s0 }
   0x5   :  { %p70_p2 = pnand %p68_p1, %p65_p0 }
   0x7   :  { %73 = shalt.err (!%p70_p2)
}
   0x8   :  { %s74_s21 = scalar_lea.vmem %s17_s13, 64  ;;  %p79_p4 = scmp.lt.s32.totalorder %s17_s13, %s17_s13 }
   0x9   :  { %p75_p3 = scmp.ne.s32.totalorder %s17_s13, %s74_s21  ;;  %p80_p5 = scmp.lt.s32.totalorder %s74_s21, %s74_s21 }
   0xb   :  { %p81_p6 = por %p80_p5, %p79_p4 }
   0xd   :  { %p82_p7 = pnand %p81_p6, %p75_p3 }
   0xf   :  { %85 = shalt.err (!%p82_p7)
}
  0x10   :  { %19 = dma.hbm_to_vmem [thread:$0]  %s166_s0, 64, %s17_s13, [#allocation3]  }
  0x11   :  { %108 = dma.done.wait [#allocation3], 64  }
  0x12   :  { %109 = vsyncadd [#allocation3], 4294967232  ;;  %v27_v0 = vld [vmem:[#allocation2] sm:$0xf]  ;;  %s113_s24 = smov 127   ;;  %s114_s25 = smov 1   ;;  %v28_v1 = vlaneseq }
  0x13   :  { %32 = vrot.lane.b32.xlu0 %v27_v0, %s113_s24  ;;  %v39_v5 = vld [vmem:[%s167_s1] sm:$0xf]  ;;  %s115_s0 = smov [#allocation5]  }
  0x14   :  { %v29_v2 = vand.u32 127, %v28_v1  ;;  %v41_v6 = vld [vmem:[%s168_s2] sm:$0xf]  ;;  %v40_v7 = vmul.f32 %v39_v5, %v27_v0  ;;  %s51_s30 = sshll.u32 %s115_s0, 4  ;;  %s52_s30 = int_to_ptr.vmem [resolvable:$true] %s51_s30 }
  0x15   :  { %s86_s4 = scalar_lea.vmem %s52_s30, 64  ;;  %p91_p9 = scmp.lt.s32.totalorder %s52_s30, %s52_s30 }
  0x16   :  { %v30_v3 = vand.u32 1, %v29_v2  ;;  %p87_p8 = scmp.ne.s32.totalorder %s52_s30, %s86_s4  ;;  %p92_p10 = scmp.lt.s32.totalorder %s86_s4, %s86_s4 }
  0x17   :  { %34 = vrot.lane.b32.xlu0 %v27_v0, %s114_s25 }
  0x18   :  { %vm31_vm0 = vcmp.eq.s32.totalorder %v30_v3, 0  ;;  %p93_p11 = por %p92_p10, %p91_p9 }
  0x1a   :  { %p94_p12 = pnand %p93_p11, %p87_p8 }
  0x85   :  { %v33_v4 = vpop.permute.xlu0 %32 }
  0x89   :  { %v35_v8 = vpop.permute.xlu0 %34 }
  0x8a   :  { %v38_v9 = vsel %vm31_vm0, %v33_v4, %v35_v8 }
  0x8b   :  { %v42_v10 = vmul.f32 %v41_v6, %v38_v9 }
  0x8d   :  { %v43_v11 = vadd.f32 %v42_v10, %v40_v7 }
  0x8f   :  { %44 = vst [vmem:[#allocation5] sm:$0xf] %v43_v11 }
  0x90   :  { %97 = shalt.err (!%p94_p12)
}
  0x91   :  { %s98_s2 = scalar_lea.hbm %s169_s3, 64 }
  0x92   :  { %p99_p13 = scmp.ne.s32.totalorder %s169_s3, %s98_s2  ;;  %p102_p0 = scmp.lt.u32.totalorder %s98_s2, %s169_s3 }
  0x94   :  { %p104_p1 = pnand %p102_p0, %p99_p13 }
  0x96   :  { %107 = shalt.err (!%p104_p1)
}
  0x97   :  { %54 = dma.vmem_to_hbm [thread:$0]  %s52_s30, 64, %s169_s3, [#allocation4]  }
  0x98   :  { %110 = dma.done.wait [#allocation4], 64  }
  0x99   :  { %111 = vsyncadd [#allocation4], 4294967232 }
  0x9a   :  { %58 = vsyncpa [#allocation3], 1 }
  0x9b   :  { %59 = vsyncpa [#allocation4], 1 }

</bundles_post_ra>
